<compile_context>
chip_gen: v5e
topology: v5e:2x2
jax: 0.10.0
libtpu: 0.0.40
codegen_flags: <defaults>
</compile_context>

<pallas_src>
import functools

import jax
import jax.numpy as jnp
from jax.experimental import pallas as pl
from jax.experimental.pallas import tpu as pltpu

EPS = 1e-16
_SMALL_BYTES = 1 << 20  # below this, the pallas grid setup dominates -> plain XLA


def _device_kind():
    try:
        return jax.devices()[0].device_kind.lower()
    except Exception:
        return ""


def _vae_loss_xla(ec, rec, z_prob, *, concept_num, var):
    """Vectorized plain-XLA path (mathematically identical to the PyTorch loop)."""
    T, B, D = ec.shape
    N = z_prob.shape[1]
    diff = rec.astype(jnp.float32) - ec.astype(jnp.float32)
    p = z_prob.astype(jnp.float32)
    nll = jnp.sum(diff * diff) / (2.0 * float(var) * B * D * T)
    kl = jnp.sum(p * jnp.log(p + EPS)) / (float(concept_num) * N * T)
    return nll + kl


def _vae_loss_kernel(ec_ref, rec_ref, prob_ref, out_ref, acc_sse, acc_kl, *,
                     scale_nll, scale_kl, t_valid, tt, steps, need_mask):
    g = pl.program_id(0)
    s = pl.program_id(1)

    @pl.when(s == 0)
    def _():
        acc_sse[...] = jnp.zeros_like(acc_sse)
        acc_kl[...] = jnp.zeros_like(acc_kl)

    # Pure-VPU elementwise work; inputs stay in their DMA dtype and are upcast
    # in-register (required on v5e, better accumulation everywhere).
    ec = ec_ref[...].astype(jnp.float32)
    rec = rec_ref[...].astype(jnp.float32)
    p = prob_ref[...].astype(jnp.float32)

    diff = rec - ec
    sq = diff * diff
    kl = p * jnp.log(p + EPS)

    if need_mask:
        # Mask rows past the true T (last partial tile and, with groups=2, the
        # clamped overhang tiles are zeroed entirely).  Trace-time constants only.
        row0 = (g * steps + s) * tt
        rows = row0 + jax.lax.broadcasted_iota(jnp.int32, (tt, 1), 0)
        valid = rows < t_valid
        sq = jnp.where(valid, sq, 0.0)
        kl = jnp.where(valid, kl, 0.0)

    # Fold sublane groups in-register: (tt, C) -> (tt//8, 8, C) -> sum over leading
    # axis is pure vreg adds (no XLU), so the resident accumulator is only (8, C).
    acc_sse[...] += sq.reshape(tt // 8, 8, sq.shape[-1]).sum(axis=0)
    acc_kl[...] += kl.reshape(tt // 8, 8, kl.shape[-1]).sum(axis=0)

    @pl.when(s == pl.num_programs(1) - 1)
    def _():
        # Tiny cross-lane reduce + two trace-time scale constants.
        out_ref[0, 0] = (jnp.sum(acc_sse[...]) * scale_nll
                         + jnp.sum(acc_kl[...]) * scale_kl)


def vae_loss(ec, rec, z_prob, *, concept_num, edge_type_num=2, var=5e-5,
             force_kernel=False):
    """ec, rec: [T, B, D]; z_prob: [T, N, E]. Returns scalar f32 loss."""
    T, B, D = ec.shape
    _, N, E = z_prob.shape
    C_ec = B * D
    C_pr = N * E

    ec_item = jnp.dtype(ec.dtype).itemsize
    pr_item = jnp.dtype(z_prob.dtype).itemsize
    total_bytes = T * (2 * C_ec * ec_item + C_pr * pr_item)

    # Small-problem fast path (and tiny-T corner): the streaming kernel is pure
    # overhead there.
    if T < 8 or (total_bytes < _SMALL_BYTES and not force_kernel):
        return _vae_loss_xla(ec, rec, z_prob, concept_num=concept_num, var=var)

    # Normalizers folded into trace-time constants (computed from ORIGINAL extents).
    scale_nll = 1.0 / (2.0 * float(var) * B * D * T)
    scale_kl = 1.0 / (float(concept_num) * N * T)

    # Free reshapes only -- NO padding copies.
    ec2 = ec.reshape(T, C_ec)
    rec2 = rec.reshape(T, C_ec)
    pr2 = z_prob.reshape(T, C_pr)

    # Generation-aware knobs.
    kind = _device_kind()
    is_v7 = ("v7" in kind) or ("tpu7" in kind)
    vmem_cap = (40 << 20) if is_v7 else (64 << 20)       # v7x: 64 MiB physical/TC
    step_target = (16 << 20) if is_v7 else (4 << 20)     # bytes streamed per step

    row_bytes = 2 * C_ec * ec_item + C_pr * pr_item
    per_buf_budget = (vmem_cap - (8 << 20)) // 2          # inputs are double-buffered
    target = min(step_target, per_buf_budget)
    tt = (target // max(row_bytes, 1)) // 8 * 8
    tt = max(8, min(tt, (T // 8) * 8))                     # multiple of 8, <= T

    n_blocks = -(-T // tt)
    two_tc = is_v7 and hasattr(pltpu, "CORE_PARALLEL")
    groups = 2 if (two_tc and n_blocks >= 2) else 1        # split only with 2 TCs
    steps = -(-n_blocks // groups)
    need_mask = not (T % tt == 0 and n_blocks % groups == 0)

    if groups * steps == n_blocks:
        def row_map(g, s):
            return (g * steps + s, 0)
    else:
        # Overhang steps of the last group clamp to the last valid block; the
        # in-kernel row mask zeroes their contribution entirely.
        def row_map(g, s):
            return (jnp.minimum(g * steps + s, n_blocks - 1), 0)

    kernel = functools.partial(
        _vae_loss_kernel,
        scale_nll=scale_nll, scale_kl=scale_kl,
        t_valid=T, tt=tt, steps=steps, need_mask=need_mask)

    # VMEM budget from the REAL itemsize: double-buffered input tiles + tiny
    # (8, C) f32 accumulators + margin, capped per generation.
    tile_bytes = tt * row_bytes
    acc_bytes = 8 * (C_ec + C_pr) * 4
    vmem_limit = int(min(vmem_cap,
                         max(16 << 20, 2 * tile_bytes + acc_bytes + (4 << 20))))

    sem0 = pltpu.CORE_PARALLEL if groups == 2 else "arbitrary"

    partials = pl.pallas_call(
        kernel,
        out_shape=jax.ShapeDtypeStruct((groups, 1), jnp.float32),
        grid_spec=pltpu.PrefetchScalarGridSpec(
            num_scalar_prefetch=0,
            grid=(groups, steps),
            in_specs=[
                pl.BlockSpec((tt, C_ec), row_map),
                pl.BlockSpec((tt, C_ec), row_map),
                pl.BlockSpec((tt, C_pr), row_map),
            ],
            out_specs=pl.BlockSpec((1, 1), lambda g, s: (g, 0),
                                   memory_space=pltpu.MemorySpace.SMEM),
            scratch_shapes=[
                pltpu.VMEM((8, C_ec), jnp.float32),
                pltpu.VMEM((8, C_pr), jnp.float32),
            ],
        ),
        compiler_params=pltpu.CompilerParams(
            dimension_semantics=(sem0, "arbitrary"),
            vmem_limit_bytes=vmem_limit,
        ),
    )(ec2, rec2, pr2)

    return jnp.sum(partials)


def vae_loss_ref(ec, rec, z_prob, *, concept_num, edge_type_num=2, var=5e-5):
    """Plain-JAX reference mirroring the PyTorch loop exactly."""
    T = ec.shape[0]
    loss = 0.0
    for t in range(T):
        out, tgt, p = rec[t], ec[t], z_prob[t]
        loss_nll = jnp.sum((out - tgt) ** 2 / (2.0 * var)) / (tgt.shape[0] * tgt.shape[1])
        loss_kl = jnp.sum(p * jnp.log(p + EPS)) / (concept_num * p.shape[0])
        loss = loss + loss_nll + loss_kl
    return loss / T


if __name__ == "__main__":
    key = jax.random.PRNGKey(0)
    k1, k2, k3, k4, k5, k6 = jax.random.split(key, 6)

    concept_num, edge_type_num = 4, 2
    var = 5e-5

    # --- Case 1: small shapes consistent with the module's forward
    #     (T=8 timesteps, ec/rec: [2,16], z_prob: [2,2]). ---
    T, B, D = 8, 2, 16
    ec = jax.random.normal(k1, (T, B, D), dtype=jnp.float32)
    rec = ec + 0.01 * jax.random.normal(k2, (T, B, D), dtype=jnp.float32)
    z_prob = jax.nn.softmax(
        jax.random.normal(k3, (T, B, edge_type_num), dtype=jnp.float32), axis=-1)

    want = vae_loss_ref(ec, rec, z_prob, concept_num=concept_num,
                        edge_type_num=edge_type_num, var=var)
    got_fast = vae_loss(ec, rec, z_prob, concept_num=concept_num,
                        edge_type_num=edge_type_num, var=var)
    got_kern = vae_loss(ec, rec, z_prob, concept_num=concept_num,
                        edge_type_num=edge_type_num, var=var, force_kernel=True)
    got_fast, got_kern = jax.block_until_ready((got_fast, got_kern))
    assert jnp.allclose(got_fast, want, rtol=1e-4, atol=1e-4), (got_fast, want)
    assert jnp.allclose(got_kern, want, rtol=1e-4, atol=1e-4), (got_kern, want)

    # --- Case 2: a size that takes the tiled streaming path
    #     (multi-step grid + T-remainder masking, still small in absolute terms). ---
    T2, B2, D2, N2 = 100, 16, 128, 16
    ec_l = jax.random.normal(k4, (T2, B2, D2), dtype=jnp.float32)
    rec_l = ec_l + 0.01 * jax.random.normal(k5, (T2, B2, D2), dtype=jnp.float32)
    z_l = jax.nn.softmax(
        jax.random.normal(k6, (T2, N2, edge_type_num), dtype=jnp.float32), axis=-1)

    want2 = _vae_loss_xla(ec_l, rec_l, z_l, concept_num=concept_num, var=var)
    got2 = jax.block_until_ready(
        vae_loss(ec_l, rec_l, z_l, concept_num=concept_num,
                 edge_type_num=edge_type_num, var=var))
    assert jnp.allclose(got2, want2, rtol=1e-4, atol=1e-4), (got2, want2)

    print("KERNEL_OK")
</pallas_src>

<mosaic_0001>
module attributes {stable_mosaic.version = 11 : i64} {
  func.func @_vae_loss_kernel(%arg0: i32, %arg1: i32, %arg2: memref<8x32xf32, #tpu.memory_space<vmem>>, %arg3: memref<8x32xf32, #tpu.memory_space<vmem>>, %arg4: memref<8x4xf32, #tpu.memory_space<vmem>>, %arg5: memref<1x1xf32, #tpu.memory_space<smem>>, %arg6: memref<8x32xf32, #tpu.memory_space<vmem>>, %arg7: memref<8x4xf32, #tpu.memory_space<vmem>>) attributes {dimension_semantics = [#tpu.dimension_semantics<arbitrary>, #tpu.dimension_semantics<arbitrary>], iteration_bounds = array<i64: 1, 1>, scalar_prefetch = 0 : i64, scratch_operands = 2 : i64, tpu.core_type = #tpu.core_type<tc>, window_params = [{transform_indices = @transform_0, window_bounds = array<i64: 8, 32>}, {transform_indices = @transform_1, window_bounds = array<i64: 8, 32>}, {transform_indices = @transform_2, window_bounds = array<i64: 8, 4>}, {transform_indices = @transform_3, window_bounds = array<i64: 1, 1>}]} {
    %c0_i32 = arith.constant 0 : i32
    %0 = arith.cmpi eq, %arg1, %c0_i32 : i32
    %1 = arith.extui %0 : i1 to i32
    %c0_i32_0 = arith.constant 0 : i32
    %2 = arith.cmpi ne, %1, %c0_i32_0 : i32
    scf.if %2 {
      %cst_18 = arith.constant 0.000000e+00 : f32
      %25 = vector.broadcast %cst_18 : f32 to vector<8x32xf32>
      %c0_19 = arith.constant 0 : index
      %c0_20 = arith.constant 0 : index
      %26 = vector.load %arg6[%c0_19, %c0_20] : memref<8x32xf32, #tpu.memory_space<vmem>>, vector<8x32xf32>
      tpu.vector_store %arg6[%c0_19, %c0_20], %25 {strides = array<i32>} : memref<8x32xf32, #tpu.memory_space<vmem>>, vector<8x32xf32>,
      %cst_21 = arith.constant 0.000000e+00 : f32
      %27 = vector.broadcast %cst_21 : f32 to vector<8x4xf32>
      %c0_22 = arith.constant 0 : index
      %c0_23 = arith.constant 0 : index
      %28 = vector.load %arg7[%c0_22, %c0_23] : memref<8x4xf32, #tpu.memory_space<vmem>>, vector<8x4xf32>
      tpu.vector_store %arg7[%c0_22, %c0_23], %27 {strides = array<i32>} : memref<8x4xf32, #tpu.memory_space<vmem>>, vector<8x4xf32>,
    } else {
    }
    %c0 = arith.constant 0 : index
    %c0_1 = arith.constant 0 : index
    %3 = vector.load %arg2[%c0, %c0_1] : memref<8x32xf32, #tpu.memory_space<vmem>>, vector<8x32xf32>
    %c0_2 = arith.constant 0 : index
    %c0_3 = arith.constant 0 : index
    %4 = vector.load %arg3[%c0_2, %c0_3] : memref<8x32xf32, #tpu.memory_space<vmem>>, vector<8x32xf32>
    %c0_4 = arith.constant 0 : index
    %c0_5 = arith.constant 0 : index
    %5 = vector.load %arg4[%c0_4, %c0_5] : memref<8x4xf32, #tpu.memory_space<vmem>>, vector<8x4xf32>
    %6 = arith.subf %4, %3 : vector<8x32xf32>
    %7 = arith.mulf %6, %6 : vector<8x32xf32>
    %cst = arith.constant 1.000000e-16 : f32
    %8 = vector.broadcast %cst : f32 to vector<8x4xf32>
    %9 = arith.addf %5, %8 : vector<8x4xf32>
    %10 = math.log %9 : vector<8x4xf32>
    %11 = arith.mulf %5, %10 : vector<8x4xf32>
    %c0_6 = arith.constant 0 : index
    %c0_7 = arith.constant 0 : index
    %12 = vector.load %arg6[%c0_6, %c0_7] : memref<8x32xf32, #tpu.memory_space<vmem>>, vector<8x32xf32>
    %13 = vector.shape_cast %7 : vector<8x32xf32> to vector<1x8x32xf32>
    %cst_8 = arith.constant dense<0.000000e+00> : vector<8x32xf32>
    %14 = vector.multi_reduction <add>, %13, %cst_8 [0] : vector<1x8x32xf32> to vector<8x32xf32>
    %15 = arith.addf %12, %14 : vector<8x32xf32>
    %c0_9 = arith.constant 0 : index
    %c0_10 = arith.constant 0 : index
    %16 = vector.load %arg6[%c0_9, %c0_10] : memref<8x32xf32, #tpu.memory_space<vmem>>, vector<8x32xf32>
    tpu.vector_store %arg6[%c0_9, %c0_10], %15 {strides = array<i32>} : memref<8x32xf32, #tpu.memory_space<vmem>>, vector<8x32xf32>,
    %c0_11 = arith.constant 0 : index
    %c0_12 = arith.constant 0 : index
    %17 = vector.load %arg7[%c0_11, %c0_12] : memref<8x4xf32, #tpu.memory_space<vmem>>, vector<8x4xf32>
    %18 = vector.shape_cast %11 : vector<8x4xf32> to vector<1x8x4xf32>
    %cst_13 = arith.constant dense<0.000000e+00> : vector<8x4xf32>
    %19 = vector.multi_reduction <add>, %18, %cst_13 [0] : vector<1x8x4xf32> to vector<8x4xf32>
    %20 = arith.addf %17, %19 : vector<8x4xf32>
    %c0_14 = arith.constant 0 : index
    %c0_15 = arith.constant 0 : index
    %21 = vector.load %arg7[%c0_14, %c0_15] : memref<8x4xf32, #tpu.memory_space<vmem>>, vector<8x4xf32>
    tpu.vector_store %arg7[%c0_14, %c0_15], %20 {strides = array<i32>} : memref<8x4xf32, #tpu.memory_space<vmem>>, vector<8x4xf32>,
    %c0_i32_16 = arith.constant 0 : i32
    %22 = arith.cmpi eq, %arg1, %c0_i32_16 : i32
    %23 = arith.extui %22 : i1 to i32
    %c0_i32_17 = arith.constant 0 : i32
    %24 = arith.cmpi ne, %23, %c0_i32_17 : i32
    scf.if %24 {
      %c0_18 = arith.constant 0 : index
      %c0_19 = arith.constant 0 : index
      %25 = vector.load %arg6[%c0_18, %c0_19] : memref<8x32xf32, #tpu.memory_space<vmem>>, vector<8x32xf32>
      %26 = vector.shape_cast %25 : vector<8x32xf32> to vector<1x8x32xf32>
      %cst_20 = arith.constant dense<0.000000e+00> : vector<1xf32>
      %27 = vector.multi_reduction <add>, %26, %cst_20 [1, 2] : vector<1x8x32xf32> to vector<1xf32>
      %28 = vector.shape_cast %27 : vector<1xf32> to vector<1x1x1xf32>
      %29 = vector.extract %28[0, 0, 0] : f32 from vector<1x1x1xf32>
      %cst_21 = arith.constant 3.906250e+01 : f32
      %30 = arith.mulf %29, %cst_21 : f32
      %c0_22 = arith.constant 0 : index
      %c0_23 = arith.constant 0 : index
      %31 = vector.load %arg7[%c0_22, %c0_23] : memref<8x4xf32, #tpu.memory_space<vmem>>, vector<8x4xf32>
      %32 = vector.shape_cast %31 : vector<8x4xf32> to vector<1x8x4xf32>
      %cst_24 = arith.constant dense<0.000000e+00> : vector<1xf32>
      %33 = vector.multi_reduction <add>, %32, %cst_24 [1, 2] : vector<1x8x4xf32> to vector<1xf32>
      %34 = vector.shape_cast %33 : vector<1xf32> to vector<1x1x1xf32>
      %35 = vector.extract %34[0, 0, 0] : f32 from vector<1x1x1xf32>
      %cst_25 = arith.constant 1.562500e-02 : f32
      %36 = arith.mulf %35, %cst_25 : f32
      %37 = arith.addf %30, %36 : f32
      %c0_26 = arith.constant 0 : index
      %c0_27 = arith.constant 0 : index
      %38 = memref.load %arg5[%c0_26, %c0_27] : memref<1x1xf32, #tpu.memory_space<smem>>
      memref.store %37, %arg5[%c0_26, %c0_27] : memref<1x1xf32, #tpu.memory_space<smem>>
    } else {
    }
    return
  }
  func.func @transform_0(%arg0: i32, %arg1: i32) -> (i32, i32) {
    %c1_i32 = arith.constant 1 : i32
    %0 = arith.muli %arg0, %c1_i32 : i32
    %1 = arith.addi %0, %arg1 : i32
    %c0_i32 = arith.constant 0 : i32
    %c0_i32_0 = arith.constant 0 : i32
    return %1, %c0_i32 : i32, i32
  }
  func.func @transform_1(%arg0: i32, %arg1: i32) -> (i32, i32) {
    %c1_i32 = arith.constant 1 : i32
    %0 = arith.muli %arg0, %c1_i32 : i32
    %1 = arith.addi %0, %arg1 : i32
    %c0_i32 = arith.constant 0 : i32
    %c0_i32_0 = arith.constant 0 : i32
    return %1, %c0_i32 : i32, i32
  }
  func.func @transform_2(%arg0: i32, %arg1: i32) -> (i32, i32) {
    %c1_i32 = arith.constant 1 : i32
    %0 = arith.muli %arg0, %c1_i32 : i32
    %1 = arith.addi %0, %arg1 : i32
    %c0_i32 = arith.constant 0 : i32
    %c0_i32_0 = arith.constant 0 : i32
    return %1, %c0_i32 : i32, i32
  }
  func.func @transform_3(%arg0: i32, %arg1: i32) -> (i32, i32) {
    %c0_i32 = arith.constant 0 : i32
    %c0_i32_0 = arith.constant 0 : i32
    return %arg0, %c0_i32 : i32, i32
  }
}

</mosaic_0001>

<bundles_post_ra>
// kernel: tpu_custom_call.1
= control target key start
LH: loop header
LB: loop body
LE: loop exit
PB: predicated region body
PF: predicated region fallthrough
CT: control target
= control target key end

     0   :  { %8 = vsyncpa [#allocation5], 0  ;;  %s242_s0 = inlined_call_operand.vmem [shape: f32[8,32], index: 0, kind: input, shape index: {}]   ;;  %s243_s1 = inlined_call_operand.hbm [shape: f32[8,32], index: 1, kind: input, shape index: {}]   ;;  %s244_s2 = inlined_call_operand.vmem [shape: f32[8,4], index: 2, kind: input, shape index: {}]   ;;  %s245_s3 = inlined_call_operand.hbm [shape: f32[1,1], index: 3, kind: output, shape index: {}]  }
   0x1   :  { %9 = vsyncpa [#allocation6], 0  ;;  %s26_s14 = sshll.u32 %s243_s1, 4  ;;  %s201_s15 = smov [#allocation4]   ;;  %s27_s14 = int_to_ptr.hbm [resolvable:$true] %s26_s14 }
   0x2   :  { %s28_s16 = sshll.u32 %s201_s15, 4  ;;  %s29_s16 = int_to_ptr.vmem [resolvable:$true] %s28_s16 }
   0x3   :  { %31 = dma.hbm_to_vmem [thread:$0]  %s27_s14, 128, %s29_s16, [#allocation5]  }
   0x4   :  { %197 = dma.done.wait [#allocation5], 128  }
   0x5   :  { %198 = vsyncadd [#allocation5], 4294967168  ;;  %vm71_vm0 = vcmask 261120   ;;  %vm73_vm1 = vcmask 31744   ;;  %v202_v0 = vmov 0.0   ;;  %v75_v1 = vld [vmem:[%s242_s0] sm:$0xff] }
   0x6   :  { %72 = vst.msk [vmem:[#allocation2] sm:$0xff] %vm71_vm0, %v202_v0  ;;  %v76_v2 = vld [vmem:[#allocation4] sm:$0xff]  ;;  %v77_v3 = vld [vmem:[%s244_s2] sm:$0xff]  ;;  %s129_s21 = sshll.u32 %s245_s3, 4  ;;  %s203_s26 = smov [#allocation7]   ;;  %s130_s21 = int_to_ptr.hbm [resolvable:$true] %s129_s21 }
   0x7   :  { %74 = vst.msk [vmem:[#allocation3] sm:$0xff] %vm73_vm1, %v202_v0  ;;  %v78_v4 = vsub.f32 %v76_v2, %v75_v1  ;;  %v80_v5 = vadd.f32 1e-16, %v77_v3 }
   0x9   :  { %v79_v7 = vmul.f32 %v78_v4, %v78_v4  ;;  %159 = vlog2.f32 %v80_v5 }
   0xd   :  { %v84_v6 = vld [vmem:[#allocation2] sm:$0xff] }
   0xe   :  { %v86_v8 = vadd.f32 %v84_v6, %v79_v7  ;;  %v89_v11 = vld [vmem:[#allocation3] sm:$0xff] }
   0xf   :  { %v160_v9 = vpop.eup %159 }
  0x10   :  { %88 = vst.msk [vmem:[#allocation2] sm:$0xff] %vm71_vm0, %v86_v8  ;;  %v82_v10 = vmul.f32 0.6931472, %v160_v9 }
  0x12   :  { %v83_v12 = vmul.f32 %v82_v10, %v77_v3 }
  0x14   :  { %v91_v14 = vadd.f32 %v89_v11, %v83_v12 }
  0x16   :  { %93 = vst.msk [vmem:[#allocation3] sm:$0xff] %vm73_vm1, %v91_v14 }
  0x17   :  { %v97_v13 = vld [vmem:[#allocation2] sm:$0xff] }
  0x18   :  { %v98_v15 = vsel %vm71_vm0, %v97_v13, 0.0 }
  0x19   :  { %99 = vadd.xlane.f32.xlu0 %v98_v15 }
  0x1d   :  { %v109_v16 = vld [vmem:[#allocation3] sm:$0xff] }
  0x1e   :  { %v110_v17 = vsel %vm73_vm1, %v109_v16, 0.0 }
  0x21   :  { %111 = vadd.xlane.f32.xlu0 %v110_v17 }
  0x8c   :  { %v100_v18 = vpop.xlane.xlu0 %99 }
  0x8d   :  { %v101_v19 = vrot.slane %v100_v18, 4 }
  0x8f   :  { %v102_v20 = vadd.f32 %v101_v19, %v100_v18 }
  0x91   :  { %v103_v21 = vrot.slane %v102_v20, 2 }
  0x93   :  { %v104_v22 = vadd.f32 %v103_v21, %v102_v20 }
  0x94   :  { %v112_v23 = vpop.xlane.xlu0 %111 }
  0x95   :  { %v105_v24 = vrot.slane %v104_v22, 1  ;;  %v113_v25 = vrot.slane %v112_v23, 4 }
  0x97   :  { %v106_v26 = vadd.f32 %v105_v24, %v104_v22  ;;  %v114_v27 = vadd.f32 %v113_v25, %v112_v23 }
  0x99   :  { %152 = vpush %v106_v26  ;;  %v115_v28 = vrot.slane %v114_v27, 2 }
  0x9b   :  { %v116_v29 = vadd.f32 %v115_v28, %v114_v27 }
  0x9d   :  { %v117_v30 = vrot.slane %v116_v29, 1 }
  0x9f   :  { %v118_v31 = vadd.f32 %v117_v30, %v116_v29 }
  0xa1   :  { %154 = vpush %v118_v31 }
  0xca   :  { %s153_s0 = spop %152 }
  0xcb   :  { %s108_s22 = smul.f32 39.0625, %s153_s0 }
  0xd2   :  { %s155_s23 = spop %154 }
  0xd3   :  { %s120_s24 = smul.f32 0.015625, %s155_s23 }
  0xd5   :  { %s121_s25 = sadd.f32 %s120_s24, %s108_s22 }
  0xd7   :  { %123 = sst [smem:[#allocation7]] %s121_s25 }
  0xd8   :  { %132 = dma.smem_to_hbm %s203_s26, 16, %s130_s21, [#allocation6]  }
  0xd9   :  { %199 = dma.done.wait [#allocation6], 16  }
  0xda   :  { %200 = vsyncadd [#allocation6], 4294967280 }
  0xdb   :  { %137 = sfence }
  0xdc   :  { %138 = vsyncpa [#allocation5], 1 }
  0xdd   :  { %139 = vsyncpa [#allocation6], 1 }

</bundles_post_ra>
